<compile_context>
chip_gen: v7x
topology: tpu7x:2x2x1
jax: 0.10.0
libtpu: 0.0.40
codegen_flags: <defaults>
</compile_context>

<pallas_src>
import math

import jax
import jax.numpy as jnp
from jax.experimental import pallas as pl
from jax.experimental.pallas import tpu as pltpu


def _graph_mac_kernel(x_ref, avail_ref, adjc_ref, ebias_ref,
                      w_enc_ref, b_enc_ref, w_msg_ref,
                      w_self_ref, w_nbr_ref, b_upd_ref,
                      w_act_ref, b_act_ref,
                      pi_ref):
    # Transposed ("rows on lanes") orientation: every activation is (feat, M) with
    # M = TB * A agent-rows packed along the lane axis (M a multiple of 128).
    xT = x_ref[...]                                                        # (F, M) bf16

    # --- GNN encoder: h = relu(W_enc x + b_enc) ---
    h = jnp.dot(w_enc_ref[...], xT, preferred_element_type=jnp.float32) + b_enc_ref[...]
    h = jnp.maximum(h, 0.0)                                                # (H, M) f32
    h_b = h.astype(jnp.bfloat16)

    # --- mean neighbor aggregation, chunked over C-wide lane slabs ---
    # adjc = kron(I_{C//A}, adj_norm^T) is a FIXED (C, C) operand, so aggregation cost is
    # linear in M (no O(M^2) block-diagonal kron, ~97% of which was multiply-by-zero).
    C = adjc_ref.shape[0]
    M = xT.shape[1]
    adj_c = adjc_ref[...]                                                  # (C, C) bf16
    chunks = [
        jnp.dot(h_b[:, c * C:(c + 1) * C], adj_c, preferred_element_type=jnp.float32)
        for c in range(M // C)
    ]
    agg = chunks[0] if len(chunks) == 1 else jnp.concatenate(chunks, axis=1)   # (H, M) f32

    # --- message: m = relu(W_msg agg + (eagg W_edge + b_msg))  [edge term hoisted] ---
    m = (jnp.dot(w_msg_ref[...], agg.astype(jnp.bfloat16),
                 preferred_element_type=jnp.float32) + ebias_ref[...])
    m = jnp.maximum(m, 0.0)                                                # (H, M) f32

    # --- node update: h2 = relu(W_self h + W_nbr m + b_upd) as two f32-accumulated dots
    #     (no (2H, M) concat temporary; reuses h_b) ---
    h2 = (jnp.dot(w_self_ref[...], h_b, preferred_element_type=jnp.float32)
          + jnp.dot(w_nbr_ref[...], m.astype(jnp.bfloat16),
                    preferred_element_type=jnp.float32)
          + b_upd_ref[...])
    h2 = jnp.maximum(h2, 0.0)                                              # (H, M) f32

    # --- actor head ---
    logits = (jnp.dot(w_act_ref[...], h2.astype(jnp.bfloat16),
                      preferred_element_type=jnp.float32) + b_act_ref[...])  # (n_act, M) f32

    # nan_to_num(nan=0, posinf=1e6, neginf=-1e6) + clamp(+-1e6)
    logits = jnp.where(jnp.isnan(logits), 0.0, logits)
    logits = jnp.clip(logits, -1.0e6, 1.0e6)

    # masked_fill(avail == 0, -1e10)   (avail is bf16 0/1; compare in f32 for v5e safety)
    logits = jnp.where(avail_ref[...].astype(jnp.float32) == 0.0, -1.0e10, logits)

    # softmax over the action (sublane) axis. After clamp/mask/max-subtraction the exps are
    # finite and the denominator is >= 1, so the original nan_to_num + renormalize collapses
    # to a single exact-reciprocal normalization.
    mx = jnp.max(logits, axis=0, keepdims=True)                            # (1, M)
    e = jnp.exp(logits - mx)
    pi = e * pl.reciprocal(jnp.sum(e, axis=0, keepdims=True), approx=False)

    pi_ref[...] = pi.astype(pi_ref.dtype)


def prepare_graph_mac(params, adj_norm, eagg, n_agents, *, rows_per_step=1024):
    """One-time, batch-invariant preparation. Cache the returned dict across forward calls.

    Assumes a single shared graph (adj_norm, eagg) for all batch elements / timesteps, which
    matches GraphMAC.forward (env.get_graph() with batch_idx == 0 for every row).
    """
    A = int(n_agents)
    # Aggregation chunk width: multiple of both the 128-lane width and A.
    C = A * (128 // math.gcd(A, 128))          # lcm(A, 128); =128 when A divides 128 (v5e MXU depth)
    batches_per_chunk = C // A
    # TB batch elements per grid step (multiple of C/A), targeting rows_per_step lane columns.
    TB = max(1, rows_per_step // C) * batches_per_chunk
    M = TB * A

    # Fixed (C, C) block-diagonal normalized adjacency (transposed) — independent of M.
    adj_chunk = jnp.kron(jnp.eye(batches_per_chunk, dtype=jnp.float32),
                         adj_norm.T.astype(jnp.float32)).astype(jnp.bfloat16)

    # Hoisted edge-message bias (eagg @ W_edge + b_msg), tiled to the (H, M) lane layout.
    edge_bias = (eagg @ params["w_edge"] + params["b_msg"]).T              # (H, A)
    ebias = jnp.tile(edge_bias, (1, TB)).astype(jnp.float32)               # (H, M)

    return {
        "adj_chunk": adj_chunk,                                            # (C, C) bf16
        "ebias": ebias,                                                    # (H, M) f32
        "w_enc": params["w_enc"].T.astype(jnp.bfloat16),                   # (H, F)
        "b_enc": params["b_enc"].T.astype(jnp.float32),                    # (H, 1)
        "w_msg": params["w_msg"].T.astype(jnp.bfloat16),                   # (H, H)
        "w_self": params["w_self"].T.astype(jnp.bfloat16),                 # (H, H)
        "w_nbr": params["w_nbr"].T.astype(jnp.bfloat16),                   # (H, H)
        "b_upd": params["b_upd"].T.astype(jnp.float32),                    # (H, 1)
        "w_act": params["w_act"].T.astype(jnp.bfloat16),                   # (n_act, H)
        "b_act": params["b_act"].T.astype(jnp.float32),                    # (n_act, 1)
    }


def graph_mac_forward(obs_t, avail_t, consts):
    """obs_t: [B, A, F], avail_t: [B, A, n_actions]. Returns pi: [B, A, n_actions] f32.

    Wrap in jax.jit so the boundary pad / cast / transposes fuse into single copies.
    All tiling constants are derived from static shapes of the prepared operands.
    """
    B, A, F = obs_t.shape
    n_actions = avail_t.shape[-1]
    H = consts["w_enc"].shape[0]
    C = consts["adj_chunk"].shape[0]
    M = consts["ebias"].shape[1]
    TB = M // A
    num_blocks = -(-B // TB)
    B_pad = num_blocks * TB

    x_flat = obs_t.reshape(B * A, F)
    a_flat = avail_t.reshape(B * A, n_actions)
    if B_pad != B:
        pad = (B_pad - B) * A
        x_flat = jnp.pad(x_flat, ((0, pad), (0, 0)))
        a_flat = jnp.pad(a_flat, ((0, pad), (0, 0)))   # padded rows fully masked -> sliced away
    xT = x_flat.T.astype(jnp.bfloat16)                 # (F, B_pad*A)
    aT = a_flat.T.astype(jnp.bfloat16)                 # (n_actions, B_pad*A); 0/1 exact in bf16

    col = lambda rows: pl.BlockSpec((rows, M), lambda i: (0, i))
    cst = lambda shape: pl.BlockSpec(shape, lambda i: (0, 0))

    grid_spec = pltpu.PrefetchScalarGridSpec(
        num_scalar_prefetch=0,
        grid=(num_blocks,),
        in_specs=[
            col(F),                   # xT            (per step)
            col(n_actions),           # availT        (per step)
            cst((C, C)),              # block-diag adj^T chunk (constant)
            cst((H, M)),              # hoisted edge bias (includes b_msg)
            cst((H, F)),              # w_enc^T
            cst((H, 1)),              # b_enc^T
            cst((H, H)),              # w_msg^T
            cst((H, H)),              # w_self^T
            cst((H, H)),              # w_nbr^T
            cst((H, 1)),              # b_upd^T
            cst((n_actions, H)),      # w_act^T
            cst((n_actions, 1)),      # b_act^T
        ],
        out_specs=col(n_actions),
    )

    piT = pl.pallas_call(
        _graph_mac_kernel,
        out_shape=jax.ShapeDtypeStruct((n_actions, B_pad * A), jnp.float32),
        grid_spec=grid_spec,
        compiler_params=pltpu.CompilerParams(dimension_semantics=("parallel",)),
    )(xT, aT, consts["adj_chunk"], consts["ebias"],
      consts["w_enc"], consts["b_enc"], consts["w_msg"],
      consts["w_self"], consts["w_nbr"], consts["b_upd"],
      consts["w_act"], consts["b_act"])

    return piT.T.reshape(B_pad, A, n_actions)[:B]


def graph_mac_reference(obs_t, avail_t, adj_norm, eagg, params):
    """Pure-JAX f32 reference of the same forward pass (for validation)."""
    h = jax.nn.relu(obs_t @ params["w_enc"] + params["b_enc"])
    agg = jnp.einsum("ij,bjh->bih", adj_norm, h)
    m = jax.nn.relu(agg @ params["w_msg"] + eagg @ params["w_edge"] + params["b_msg"])
    h2 = jax.nn.relu(h @ params["w_self"] + m @ params["w_nbr"] + params["b_upd"])
    logits = h2 @ params["w_act"] + params["b_act"]
    logits = jnp.where(jnp.isnan(logits), 0.0, logits)
    logits = jnp.clip(logits, -1.0e6, 1.0e6)
    logits = jnp.where(avail_t == 0.0, -1.0e10, logits)
    pi = jax.nn.softmax(logits, axis=-1)
    pi = jnp.where(jnp.isnan(pi), 1.0e-10, pi)
    return pi / jnp.sum(pi, axis=-1, keepdims=True)


def build_dense_graph(edge_index, edge_attr, n_nodes):
    """Densify (edge_index [2,E], edge_attr [E,Ed]) into mean-aggregation operands."""
    src = edge_index[0]
    dst = edge_index[1]
    adj = jnp.zeros((n_nodes, n_nodes), jnp.float32).at[dst, src].add(1.0)
    deg = jnp.maximum(adj.sum(axis=-1, keepdims=True), 1.0)
    adj_norm = adj / deg
    eagg = jnp.zeros((n_nodes, edge_attr.shape[1]), jnp.float32).at[dst].add(edge_attr)
    eagg = eagg / deg
    return adj_norm, eagg


def init_params(key, F, Ed, H, n_actions):
    ks = jax.random.split(key, 8)
    s = lambda k, shape, fan_in: (jax.random.normal(k, shape, jnp.float32)
                                  * (1.0 / jnp.sqrt(jnp.float32(fan_in))))
    return {
        "w_enc":  s(ks[0], (F, H), F),
        "b_enc":  jnp.zeros((1, H), jnp.float32),
        "w_msg":  s(ks[1], (H, H), H),
        "w_edge": s(ks[2], (Ed, H), Ed),
        "b_msg":  jnp.zeros((1, H), jnp.float32),
        "w_self": s(ks[3], (H, H), H),
        "w_nbr":  s(ks[4], (H, H), H),
        "b_upd":  jnp.zeros((1, H), jnp.float32),
        "w_act":  s(ks[5], (H, n_actions), H),
        "b_act":  jnp.zeros((1, n_actions), jnp.float32),
    }
    # TODO(synk): critic head (graph-level value) is discarded by GraphMAC.forward, so omitted.


if __name__ == "__main__":
    # Small MARL-rollout-like shapes: B parallel envs, A agents, F node features.
    B, A, F = 40, 8, 16
    Ed, H, n_actions = 4, 32, 8

    key = jax.random.PRNGKey(0)
    k_obs, k_avail, k_edge, k_par = jax.random.split(key, 4)

    obs_t = jax.random.normal(k_obs, (B, A, F), jnp.float32)            # batch['obs'][:, t]
    # avail_actions: guarantee at least one legal action per agent (action 0 always legal).
    avail_t = (jax.random.uniform(k_avail, (B, A, n_actions)) > 0.3).astype(jnp.float32)
    avail_t = avail_t.at[:, :, 0].set(1.0)

    # env.get_graph(): bidirectional ring over A agents.
    src = jnp.arange(A, dtype=jnp.int32)
    dst = (src + 1) % A
    edge_index = jnp.concatenate(
        [jnp.stack([src, dst], axis=0), jnp.stack([dst, src], axis=0)], axis=1)  # [2, 2A]
    edge_attr = jax.random.normal(k_edge, (edge_index.shape[1], Ed), jnp.float32)

    adj_norm, eagg = build_dense_graph(edge_index, edge_attr, A)
    params = init_params(k_par, F, Ed, H, n_actions)

    # One-time, cached prep. rows_per_step=256 -> TB=32 batch elems per grid step (M=256 lanes,
    # 2 aggregation chunks) and an even 2-step "parallel" grid for this B (v7x-friendly).
    consts = prepare_graph_mac(params, adj_norm, eagg, A, rows_per_step=256)
    fwd = jax.jit(graph_mac_forward)

    pi = jax.block_until_ready(fwd(obs_t, avail_t, consts))

    assert pi.shape == (B, A, n_actions)
    assert bool(jnp.all(jnp.isfinite(pi)))
    row_sums = jnp.sum(pi, axis=-1)
    assert bool(jnp.all(jnp.abs(row_sums - 1.0) < 1e-4))
    # masked (unavailable) actions must get ~zero probability
    assert float(jnp.max(jnp.where(avail_t == 0.0, pi, 0.0))) < 1e-6

    # validate against the pure-JAX f32 reference (bf16 MXU operands => loose tolerance)
    pi_ref = graph_mac_reference(obs_t, avail_t, adj_norm, eagg, params)
    assert float(jnp.max(jnp.abs(pi - pi_ref))) < 1e-1

    print("KERNEL_OK")
</pallas_src>

<mosaic_0001>
module attributes {stable_mosaic.version = 11 : i64} {
  func.func @_graph_mac_kernel(%arg0: i32, %arg1: memref<16x256xbf16, #tpu.memory_space<vmem>>, %arg2: memref<8x256xbf16, #tpu.memory_space<vmem>>, %arg3: memref<128x128xbf16, #tpu.memory_space<vmem>>, %arg4: memref<32x256xf32, #tpu.memory_space<vmem>>, %arg5: memref<32x16xbf16, #tpu.memory_space<vmem>>, %arg6: memref<32x1xf32, #tpu.memory_space<vmem>>, %arg7: memref<32x32xbf16, #tpu.memory_space<vmem>>, %arg8: memref<32x32xbf16, #tpu.memory_space<vmem>>, %arg9: memref<32x32xbf16, #tpu.memory_space<vmem>>, %arg10: memref<32x1xf32, #tpu.memory_space<vmem>>, %arg11: memref<8x32xbf16, #tpu.memory_space<vmem>>, %arg12: memref<8x1xf32, #tpu.memory_space<vmem>>, %arg13: memref<8x256xf32, #tpu.memory_space<vmem>>) attributes {dimension_semantics = [#tpu.dimension_semantics<parallel>], iteration_bounds = array<i64: 2>, scalar_prefetch = 0 : i64, scratch_operands = 0 : i64, tpu.core_type = #tpu.core_type<tc>, window_params = [{transform_indices = @transform_0, window_bounds = array<i64: 16, 256>}, {transform_indices = @transform_1, window_bounds = array<i64: 8, 256>}, {pipeline_mode = #tpu.pipeline_mode<synchronous>, transform_indices = @transform_2, window_bounds = array<i64: 128, 128>}, {pipeline_mode = #tpu.pipeline_mode<synchronous>, transform_indices = @transform_3, window_bounds = array<i64: 32, 256>}, {pipeline_mode = #tpu.pipeline_mode<synchronous>, transform_indices = @transform_4, window_bounds = array<i64: 32, 16>}, {pipeline_mode = #tpu.pipeline_mode<synchronous>, transform_indices = @transform_5, window_bounds = array<i64: 32, 1>}, {pipeline_mode = #tpu.pipeline_mode<synchronous>, transform_indices = @transform_6, window_bounds = array<i64: 32, 32>}, {pipeline_mode = #tpu.pipeline_mode<synchronous>, transform_indices = @transform_7, window_bounds = array<i64: 32, 32>}, {pipeline_mode = #tpu.pipeline_mode<synchronous>, transform_indices = @transform_8, window_bounds = array<i64: 32, 32>}, {pipeline_mode = #tpu.pipeline_mode<synchronous>, transform_indices = @transform_9, window_bounds = array<i64: 32, 1>}, {pipeline_mode = #tpu.pipeline_mode<synchronous>, transform_indices = @transform_10, window_bounds = array<i64: 8, 32>}, {pipeline_mode = #tpu.pipeline_mode<synchronous>, transform_indices = @transform_11, window_bounds = array<i64: 8, 1>}, {transform_indices = @transform_12, window_bounds = array<i64: 8, 256>}]} {
    %c0 = arith.constant 0 : index
    %c0_0 = arith.constant 0 : index
    %0 = vector.load %arg1[%c0, %c0_0] : memref<16x256xbf16, #tpu.memory_space<vmem>>, vector<16x256xbf16>
    %c0_1 = arith.constant 0 : index
    %c0_2 = arith.constant 0 : index
    %1 = vector.load %arg5[%c0_1, %c0_2] : memref<32x16xbf16, #tpu.memory_space<vmem>>, vector<32x16xbf16>
    %cst = arith.constant dense<0.000000e+00> : vector<32x256xf32>
    %2 = tpu.matmul %1, %0, %cst {dimension_numbers = #tpu.dot_dimension_numbers<[1], [0], [0], [1], [0, 0, 1, 1], [], []>} : vector<32x16xbf16>, vector<16x256xbf16>, vector<32x256xf32> -> vector<32x256xf32>
    %c0_3 = arith.constant 0 : index
    %c0_4 = arith.constant 0 : index
    %3 = vector.load %arg6[%c0_3, %c0_4] : memref<32x1xf32, #tpu.memory_space<vmem>>, vector<32x1xf32>
    %4 = vector.broadcast %3 : vector<32x1xf32> to vector<32x256xf32>
    %5 = arith.addf %2, %4 : vector<32x256xf32>
    %cst_5 = arith.constant 0.000000e+00 : f32
    %6 = vector.broadcast %cst_5 : f32 to vector<32x256xf32>
    %7 = arith.maximumf %5, %6 : vector<32x256xf32>
    %8 = arith.truncf %7 : vector<32x256xf32> to vector<32x256xbf16>
    %c0_6 = arith.constant 0 : index
    %c0_7 = arith.constant 0 : index
    %9 = vector.load %arg3[%c0_6, %c0_7] : memref<128x128xbf16, #tpu.memory_space<vmem>>, vector<128x128xbf16>
    %10 = vector.extract_strided_slice %8 {offsets = [0, 0], sizes = [32, 128], strides = [1, 1]} : vector<32x256xbf16> to vector<32x128xbf16>
    %cst_8 = arith.constant dense<0.000000e+00> : vector<32x128xf32>
    %11 = tpu.matmul %10, %9, %cst_8 {dimension_numbers = #tpu.dot_dimension_numbers<[1], [0], [0], [1], [0, 0, 1, 1], [], []>} : vector<32x128xbf16>, vector<128x128xbf16>, vector<32x128xf32> -> vector<32x128xf32>
    %12 = vector.extract_strided_slice %8 {offsets = [0, 128], sizes = [32, 128], strides = [1, 1]} : vector<32x256xbf16> to vector<32x128xbf16>
    %cst_9 = arith.constant dense<0.000000e+00> : vector<32x128xf32>
    %13 = tpu.matmul %12, %9, %cst_9 {dimension_numbers = #tpu.dot_dimension_numbers<[1], [0], [0], [1], [0, 0, 1, 1], [], []>} : vector<32x128xbf16>, vector<128x128xbf16>, vector<32x128xf32> -> vector<32x128xf32>
    %14 = tpu.concatenate %11, %13 in 1 : vector<32x128xf32>, vector<32x128xf32> -> vector<32x256xf32>
    %c0_10 = arith.constant 0 : index
    %c0_11 = arith.constant 0 : index
    %15 = vector.load %arg7[%c0_10, %c0_11] : memref<32x32xbf16, #tpu.memory_space<vmem>>, vector<32x32xbf16>
    %16 = arith.truncf %14 : vector<32x256xf32> to vector<32x256xbf16>
    %cst_12 = arith.constant dense<0.000000e+00> : vector<32x256xf32>
    %17 = tpu.matmul %15, %16, %cst_12 {dimension_numbers = #tpu.dot_dimension_numbers<[1], [0], [0], [1], [0, 0, 1, 1], [], []>} : vector<32x32xbf16>, vector<32x256xbf16>, vector<32x256xf32> -> vector<32x256xf32>
    %c0_13 = arith.constant 0 : index
    %c0_14 = arith.constant 0 : index
    %18 = vector.load %arg4[%c0_13, %c0_14] : memref<32x256xf32, #tpu.memory_space<vmem>>, vector<32x256xf32>
    %19 = arith.addf %17, %18 : vector<32x256xf32>
    %cst_15 = arith.constant 0.000000e+00 : f32
    %20 = vector.broadcast %cst_15 : f32 to vector<32x256xf32>
    %21 = arith.maximumf %19, %20 : vector<32x256xf32>
    %c0_16 = arith.constant 0 : index
    %c0_17 = arith.constant 0 : index
    %22 = vector.load %arg8[%c0_16, %c0_17] : memref<32x32xbf16, #tpu.memory_space<vmem>>, vector<32x32xbf16>
    %cst_18 = arith.constant dense<0.000000e+00> : vector<32x256xf32>
    %23 = tpu.matmul %22, %8, %cst_18 {dimension_numbers = #tpu.dot_dimension_numbers<[1], [0], [0], [1], [0, 0, 1, 1], [], []>} : vector<32x32xbf16>, vector<32x256xbf16>, vector<32x256xf32> -> vector<32x256xf32>
    %c0_19 = arith.constant 0 : index
    %c0_20 = arith.constant 0 : index
    %24 = vector.load %arg9[%c0_19, %c0_20] : memref<32x32xbf16, #tpu.memory_space<vmem>>, vector<32x32xbf16>
    %25 = arith.truncf %21 : vector<32x256xf32> to vector<32x256xbf16>
    %cst_21 = arith.constant dense<0.000000e+00> : vector<32x256xf32>
    %26 = tpu.matmul %24, %25, %cst_21 {dimension_numbers = #tpu.dot_dimension_numbers<[1], [0], [0], [1], [0, 0, 1, 1], [], []>} : vector<32x32xbf16>, vector<32x256xbf16>, vector<32x256xf32> -> vector<32x256xf32>
    %27 = arith.addf %23, %26 : vector<32x256xf32>
    %c0_22 = arith.constant 0 : index
    %c0_23 = arith.constant 0 : index
    %28 = vector.load %arg10[%c0_22, %c0_23] : memref<32x1xf32, #tpu.memory_space<vmem>>, vector<32x1xf32>
    %29 = vector.broadcast %28 : vector<32x1xf32> to vector<32x256xf32>
    %30 = arith.addf %27, %29 : vector<32x256xf32>
    %cst_24 = arith.constant 0.000000e+00 : f32
    %31 = vector.broadcast %cst_24 : f32 to vector<32x256xf32>
    %32 = arith.maximumf %30, %31 : vector<32x256xf32>
    %c0_25 = arith.constant 0 : index
    %c0_26 = arith.constant 0 : index
    %33 = vector.load %arg11[%c0_25, %c0_26] : memref<8x32xbf16, #tpu.memory_space<vmem>>, vector<8x32xbf16>
    %34 = arith.truncf %32 : vector<32x256xf32> to vector<32x256xbf16>
    %cst_27 = arith.constant dense<0.000000e+00> : vector<8x256xf32>
    %35 = tpu.matmul %33, %34, %cst_27 {dimension_numbers = #tpu.dot_dimension_numbers<[1], [0], [0], [1], [0, 0, 1, 1], [], []>} : vector<8x32xbf16>, vector<32x256xbf16>, vector<8x256xf32> -> vector<8x256xf32>
    %c0_28 = arith.constant 0 : index
    %c0_29 = arith.constant 0 : index
    %36 = vector.load %arg12[%c0_28, %c0_29] : memref<8x1xf32, #tpu.memory_space<vmem>>, vector<8x1xf32>
    %37 = vector.broadcast %36 : vector<8x1xf32> to vector<8x256xf32>
    %38 = arith.addf %35, %37 : vector<8x256xf32>
    %39 = arith.cmpf one, %38, %38 : vector<8x256xf32>
    %cst_30 = arith.constant 0.000000e+00 : f32
    %40 = vector.broadcast %cst_30 : f32 to vector<8x256xf32>
    %41 = arith.select %39, %40, %38 : vector<8x256xi1>, vector<8x256xf32>
    %cst_31 = arith.constant -1.000000e+06 : f32
    %cst_32 = arith.constant 1.000000e+06 : f32
    %42 = vector.broadcast %cst_31 : f32 to vector<8x256xf32>
    %43 = arith.maximumf %42, %41 : vector<8x256xf32>
    %44 = vector.broadcast %cst_32 : f32 to vector<8x256xf32>
    %45 = arith.minimumf %44, %43 : vector<8x256xf32>
    %c0_33 = arith.constant 0 : index
    %c0_34 = arith.constant 0 : index
    %46 = vector.load %arg2[%c0_33, %c0_34] : memref<8x256xbf16, #tpu.memory_space<vmem>>, vector<8x256xbf16>
    %47 = arith.extf %46 : vector<8x256xbf16> to vector<8x256xf32>
    %cst_35 = arith.constant 0.000000e+00 : f32
    %48 = vector.broadcast %cst_35 : f32 to vector<8x256xf32>
    %49 = arith.cmpf oeq, %47, %48 : vector<8x256xf32>
    %cst_36 = arith.constant -1.000000e+10 : f32
    %50 = vector.broadcast %cst_36 : f32 to vector<8x256xf32>
    %51 = arith.select %49, %50, %45 : vector<8x256xi1>, vector<8x256xf32>
    %cst_37 = arith.constant dense<0xFF800000> : vector<256xf32>
    %52 = vector.multi_reduction <maximumf>, %51, %cst_37 [0] : vector<8x256xf32> to vector<256xf32>
    %53 = vector.shape_cast %52 : vector<256xf32> to vector<1x256xf32>
    %54 = vector.broadcast %53 : vector<1x256xf32> to vector<8x256xf32>
    %55 = arith.subf %51, %54 : vector<8x256xf32>
    %56 = math.exp %55 : vector<8x256xf32>
    %cst_38 = arith.constant dense<0.000000e+00> : vector<256xf32>
    %57 = vector.multi_reduction <add>, %56, %cst_38 [0] : vector<8x256xf32> to vector<256xf32>
    %58 = vector.shape_cast %57 : vector<256xf32> to vector<1x256xf32>
    %59 = tpu.reciprocal %58 : vector<1x256xf32> -> vector<1x256xf32>
    %60 = vector.broadcast %59 : vector<1x256xf32> to vector<8x256xf32>
    %61 = arith.mulf %56, %60 : vector<8x256xf32>
    %c0_39 = arith.constant 0 : index
    %c0_40 = arith.constant 0 : index
    %62 = vector.load %arg13[%c0_39, %c0_40] : memref<8x256xf32, #tpu.memory_space<vmem>>, vector<8x256xf32>
    tpu.vector_store %arg13[%c0_39, %c0_40], %61 {strides = array<i32>} : memref<8x256xf32, #tpu.memory_space<vmem>>, vector<8x256xf32>,
    return
  }
  func.func @transform_0(%arg0: i32) -> (i32, i32) {
    %c0_i32 = arith.constant 0 : i32
    %c0_i32_0 = arith.constant 0 : i32
    return %c0_i32, %arg0 : i32, i32
  }
  func.func @transform_1(%arg0: i32) -> (i32, i32) {
    %c0_i32 = arith.constant 0 : i32
    %c0_i32_0 = arith.constant 0 : i32
    return %c0_i32, %arg0 : i32, i32
  }
  func.func @transform_2(%arg0: i32) -> (i32, i32) {
    %c0_i32 = arith.constant 0 : i32
    %c0_i32_0 = arith.constant 0 : i32
    %c0_i32_1 = arith.constant 0 : i32
    return %c0_i32, %c0_i32_0 : i32, i32
  }
  func.func @transform_3(%arg0: i32) -> (i32, i32) {
    %c0_i32 = arith.constant 0 : i32
    %c0_i32_0 = arith.constant 0 : i32
    %c0_i32_1 = arith.constant 0 : i32
    return %c0_i32, %c0_i32_0 : i32, i32
  }
  func.func @transform_4(%arg0: i32) -> (i32, i32) {
    %c0_i32 = arith.constant 0 : i32
    %c0_i32_0 = arith.constant 0 : i32
    %c0_i32_1 = arith.constant 0 : i32
    return %c0_i32, %c0_i32_0 : i32, i32
  }
  func.func @transform_5(%arg0: i32) -> (i32, i32) {
    %c0_i32 = arith.constant 0 : i32
    %c0_i32_0 = arith.constant 0 : i32
    %c0_i32_1 = arith.constant 0 : i32
    return %c0_i32, %c0_i32_0 : i32, i32
  }
  func.func @transform_6(%arg0: i32) -> (i32, i32) {
    %c0_i32 = arith.constant 0 : i32
    %c0_i32_0 = arith.constant 0 : i32
    %c0_i32_1 = arith.constant 0 : i32
    return %c0_i32, %c0_i32_0 : i32, i32
  }
  func.func @transform_7(%arg0: i32) -> (i32, i32) {
    %c0_i32 = arith.constant 0 : i32
    %c0_i32_0 = arith.constant 0 : i32
    %c0_i32_1 = arith.constant 0 : i32
    return %c0_i32, %c0_i32_0 : i32, i32
  }
  func.func @transform_8(%arg0: i32) -> (i32, i32) {
    %c0_i32 = arith.constant 0 : i32
    %c0_i32_0 = arith.constant 0 : i32
    %c0_i32_1 = arith.constant 0 : i32
    return %c0_i32, %c0_i32_0 : i32, i32
  }
  func.func @transform_9(%arg0: i32) -> (i32, i32) {
    %c0_i32 = arith.constant 0 : i32
    %c0_i32_0 = arith.constant 0 : i32
    %c0_i32_1 = arith.constant 0 : i32
    return %c0_i32, %c0_i32_0 : i32, i32
  }
  func.func @transform_10(%arg0: i32) -> (i32, i32) {
    %c0_i32 = arith.constant 0 : i32
    %c0_i32_0 = arith.constant 0 : i32
    %c0_i32_1 = arith.constant 0 : i32
    return %c0_i32, %c0_i32_0 : i32, i32
  }
  func.func @transform_11(%arg0: i32) -> (i32, i32) {
    %c0_i32 = arith.constant 0 : i32
    %c0_i32_0 = arith.constant 0 : i32
    %c0_i32_1 = arith.constant 0 : i32
    return %c0_i32, %c0_i32_0 : i32, i32
  }
  func.func @transform_12(%arg0: i32) -> (i32, i32) {
    %c0_i32 = arith.constant 0 : i32
    %c0_i32_0 = arith.constant 0 : i32
    return %c0_i32, %arg0 : i32, i32
  }
}

</mosaic_0001>

<bundles_post_ra>
// kernel: graph_mac_forward.1
= control target key start
LH: loop header
LB: loop body
LE: loop exit
PB: predicated region body
PF: predicated region fallthrough
CT: control target
= control target key end

     0   :  { %s1483_s21 = smov 0   ;;  %s1485_s22 = smov 0   ;;  %s1680_s0 = inlined_call_operand.vmem [shape: bf16[16,512], index: 0, kind: input, shape index: {}]   ;;  %s1681_s1 = inlined_call_operand.vmem [shape: bf16[8,512], index: 1, kind: input, shape index: {}]   ;;  %s1682_s2 = inlined_call_operand.vmem [shape: bf16[128,128], index: 2, kind: input, shape index: {}]   ;;  %s1683_s3 = inlined_call_operand.vmem [shape: f32[32,256], index: 3, kind: input, shape index: {}]   ;;  %s1684_s4 = inlined_call_operand.vmem [shape: bf16[32,16], index: 4, kind: input, shape index: {}]   ;;  %s1685_s5 = inlined_call_operand.vmem [shape: f32[32,1], index: 5, kind: input, shape index: {}]   ;;  %s1686_s6 = inlined_call_operand.vmem [shape: bf16[32,32], index: 6, kind: input, shape index: {}]   ;;  %s1687_s7 = inlined_call_operand.vmem [shape: bf16[32,32], index: 7, kind: input, shape index: {}]   ;;  %s1688_s8 = inlined_call_operand.vmem [shape: bf16[32,32], index: 8, kind: input, shape index: {}]   ;;  %s1689_s9 = inlined_call_operand.vmem [shape: f32[32,1], index: 9, kind: input, shape index: {}]   ;;  %s1690_s10 = inlined_call_operand.vmem [shape: bf16[8,32], index: 10, kind: input, shape index: {}]   ;;  %s1691_s11 = inlined_call_operand.vmem [shape: f32[8,1], index: 11, kind: input, shape index: {}]   ;;  %s1692_s12 = inlined_call_operand.vmem [shape: f32[8,512], index: 12, kind: output, shape index: {}]  }
   0x1   :  { %s1487_s23 = smov 0  }
   0x2 LB: > { %s1226_s24 = sadd.s32 4294967295, %s1415_s23   ;;  %s1500_s25 = sadd.s32 1, %s1415_s23   ;;  %s1415_s23 = sphi %s1487_s23, %s1695_s23   ;;  %s1411_s22 = sphi %s1485_s22, %s1694_s22   ;;  %s1407_s21 = sphi %s1483_s21, %s1693_s21  }
   0x3   : > { %s26_s26 = ssub.s32 %s1415_s23, %s1500_s25  ;;  %s29_s27 = sadd.s32 1, %s1411_s22 }
   0x4   : > { %p27_p0 = scmp.eq.s32.totalorder %s26_s26, 0  ;;  %p36_p1 = scmp.ne.s32.totalorder %s1411_s22, %s1407_s21 }
   0x5   : > { %p37_p2 = scmp.eq.s32.totalorder %s1415_s23, 0  ;;  %p1229_p4 = scmp.ge.s32.totalorder %s1415_s23, 2 }
   0x6   : > { %s1509_s28 = scalar_select %p27_p0, %s1411_s22, %s29_s27  }
   0x7   : > { %p38_p3 = por %p37_p2, %p36_p1  ;;  %354 = sbr.rel (%p1229_p4) target bundleno = 21 (0x15), region = 56 }
   0xe   : > { %357 = sbr.rel (!%p38_p3) target bundleno = 21 (0x15), region = 60  ;;  %s359_s29 = sand.u32 (%p38_p3), 1, %s1411_s22  }
   0xf   : > { %s1270_s30 = sshll.u32 (%p38_p3), %s1415_s23, 3  ;;  %s1230_s13 = sshll.u32 (%p38_p3), %s359_s29, 4 }
  0x10   : > { %s364_s16 = scalar_lea.vmem (%p38_p3), %s1680_s0, %s1270_s30  ;;  %s361_s17 = scalar_lea.vmem (%p38_p3), [#allocation2], %s1230_s13 }
  0x11   : > { %v394_v0 = vld [vmem:[%s364_s16] sm:$0xff] (%p38_p3)  ;;  %v396_v1 = vld [vmem:[%s364_s16 + $0x10] sm:$0xff] (%p38_p3) }
  0x12   : > { %395 = vst [vmem:[%s361_s17] sm:$0xff] (%p38_p3), %v394_v0  ;;  %397 = vst [vmem:[%s361_s17 + $0x8] sm:$0xff] (%p38_p3), %v396_v1 }
  0x15 PF: > { %p1233_p5 = scmp.ge.s32.totalorder %s1415_s23, 1  ;;  %p411_p6 = scmp.lt.s32.totalorder %s1415_s23, 3 }
  0x17   : > { %p412_p7 = pnand %p1233_p5, %p411_p6 }
  0x18   : > { %s418_s18 = sand.u32 (!%p412_p7), 1, %s1407_s21   ;;  %v1417_v2 = vmov (!%p412_p7), 0   ;;  %v484_v3 = vld [vmem:[%s1685_s5] sm:$0xff] (!%p412_p7)  ;;  %v485_v6 = vld [vmem:[%s1685_s5 + $0x8] sm:$0xff] (!%p412_p7)  ;;  %v486_v7 = vld [vmem:[%s1685_s5 + $0x10] sm:$0xff] (!%p412_p7)  ;;  %vm528_vm0 = vcmask (!%p412_p7), 130048  }
  0x19   : > { %415 = sbr.rel (%p412_p7) target bundleno = 1241 (0x4d9), region = 102  ;;  %s1234_s19 = sshll.u32 (!%p412_p7), %s418_s18, 4  ;;  %567 = vmatprep.mubr.bf16.mxu1 (!%p412_p7), %v1417_v2  ;;  %1364 = vset.pattern.permute.xlu0 (!%p412_p7), %v1417_v2  ;;  %v1369_v8 = vld [vmem:[%s1684_s4] sm:$0xff] (!%p412_p7)   ;;  %v487_v10 = vld [vmem:[%s1685_s5 + $0x18] sm:$0xff] (!%p412_p7)  ;;  %v1372_v12 = vld [vmem:[%s1682_s2 + $0x8] sm:$0xff] (!%p412_p7)   ;;  %vm788_vm1 = vcmask (!%p412_p7), 261120  }
  0x1a   : > { %1365 = vset.pattern.permute.xlu1 (!%p412_p7), %v1417_v2  ;;  %s420_s27 = scalar_lea.vmem (!%p412_p7), [#allocation2], %s1234_s19  ;;  %490 = vperm.xlu0 (!%p412_p7), %1364, %v484_v3   ;;  %v1006_v9 = vld [vmem:[%s1689_s9] sm:$0xff] (!%p412_p7)  ;;  %v1007_v13 = vld [vmem:[%s1689_s9 + $0x8] sm:$0xff] (!%p412_p7)  ;;  %v1008_v14 = vld [vmem:[%s1689_s9 + $0x10] sm:$0xff] (!%p412_p7)  ;;  %s1235_s30 = sshll.u32 (!%p412_p7), %s1226_s24, 1 }
  0x1b   : > { %v1366_v4 = vld [vmem:[%s420_s27 + $0x4] ss:$8 sps:$4 sm:$0xff] (!%p412_p7)   ;;  %v1368_v5 = vld [vmem:[%s420_s27] ss:$8 sps:$4 sm:$0xff] (!%p412_p7)   ;;  %500 = vperm.xlu1 (!%p412_p7), %1365, %v486_v7   ;;  %p466_p8 = scmp.lt.s32.totalorder (!%p412_p7), %s1235_s30, 3 }
  0x1c   : > { %535 = vmatprep.subr.bf16.mxu1 (!%p412_p7), %v1366_v4  ;;  %v1371_v11 = vld [vmem:[%s1682_s2] sm:$0xff] (!%p412_p7)   ;;  %v1373_v15 = vld [vmem:[%s1682_s2 + $0x10] sm:$0xff] (!%p412_p7)   ;;  %v1370_v16 = vld [vmem:[%s1684_s4 + $0x8] sm:$0xff] (!%p412_p7)  }
  0x1d   : > { %536 = vmatpush1.bf16.msra.mxu1 (!%p412_p7), %v1368_v5  ;;  %v1009_v17 = vld [vmem:[%s1689_s9 + $0x18] sm:$0xff] (!%p412_p7)  ;;  %1311 = vmatprep.subr.bf16.mxu0 (!%p412_p7), %v1371_v11  ;;  %v1051_v18 = vld [vmem:[%s1691_s11] sm:$0xff] (!%p412_p7)  ;;  %v1376_v21 = vld [vmem:[%s1682_s2 + $0x28] sm:$0xff] (!%p412_p7)  }
  0x1e   : > { %495 = vperm.xlu0 (!%p412_p7), %1364, %v485_v6   ;;  %1291 = vmatprep.subr.bf16.mxu1 (!%p412_p7), %v1371_v11  ;;  %v1374_v19 = vld [vmem:[%s1682_s2 + $0x18] sm:$0xff] (!%p412_p7)   ;;  %v1375_v20 = vld [vmem:[%s1682_s2 + $0x20] sm:$0xff] (!%p412_p7)   ;;  %v1377_v22 = vld [vmem:[%s1682_s2 + $0x30] sm:$0xff] (!%p412_p7)  }
  0x1f   : > { %505 = vperm.xlu1 (!%p412_p7), %1365, %v487_v10   ;;  %1312 = vmatpush3.bf16.msra.mxu0 (!%p412_p7), %v1371_v11  ;;  %v1378_v23 = vld [vmem:[%s1682_s2 + $0x38] sm:$0xff] (!%p412_p7)   ;;  %v1379_v5 = vld [vmem:[%s1686_s6] sm:$0xff] (!%p412_p7)   ;;  %v1380_v6 = vld [vmem:[%s1686_s6 + $0x8] sm:$0xff] (!%p412_p7)  }
  0x20   : > { %1243 = vmatmul.mubr.msk.bf16.vlgmr.msra.gmra.mrb[0].mxu1 %vm528_vm0, %v1369_v8  ;;  %1313 = vmatprep.subr.bf16.mxu0 %v1372_v12  ;;  %v770_v7 = vld [vmem:[%s1683_s3] sm:$0xff]  ;;  %v771_v8 = vld [vmem:[%s1683_s3 + $0x8] sm:$0xff]  ;;  %v772_v10 = vld [vmem:[%s1683_s3 + $0x10] sm:$0xff]  ;;  %s1697_s30 = smov (!%p466_p8, %s1235_s30), 3 }
  0x21   : > { %577 = vmatprep.mubr.bf16.mxu1 %v1417_v2  ;;  %1292 = vmatpush3.bf16.msra.mxu1 %v1371_v11  ;;  %s1236_s21 = sshll.u32 %s1697_s30, 2  ;;  %s1238_s23 = sshll.u32 %s1697_s30, 3 }
  0x22   : > { %1012 = vperm.xlu0 %1364, %v1006_v9   ;;  %1293 = vmatprep.subr.bf16.mxu1 %v1372_v12  ;;  %s469_s15 = scalar_lea.vmem %s1681_s1, %s1236_s21  ;;  %s475_s17 = scalar_lea.vmem %s1692_s12, %s1238_s23 }
  0x23   : > { %1017 = vperm.xlu1 %1365, %v1007_v13   ;;  %1314 = vmatpush3.bf16.msra.mxu0 %v1372_v12  ;;  %v773_v13 = vld [vmem:[%s1683_s3 + $0x18] sm:$0xff] }
  0x24   : > { %1315 = vmatprep.subr.bf16.mxu0 %v1373_v15 }
  0x25   : > { %1294 = vmatpush3.bf16.msra.mxu1 %v1372_v12 }
  0x26   : > { %1022 = vperm.xlu0 %1364, %v1008_v14   ;;  %1295 = vmatprep.subr.bf16.mxu1 %v1373_v15 }
  0x27   : > { %1027 = vperm.xlu1 %1365, %v1009_v17   ;;  %1316 = vmatpush3.bf16.msra.mxu0 %v1373_v15 }
  0x28   : > { %1244 = vmatmul.mubr.msk.bf16.gmra.mrb[4].mxu1 %vm528_vm0, %v1370_v16  ;;  %1317 = vmatprep.subr.bf16.mxu0 %v1374_v19 }
  0x29   : > { %1296 = vmatpush3.bf16.msra.mxu1 %v1373_v15 }
  0x2a   : > { %1054 = vperm.xlu0 %1364, %v1051_v18   ;;  %1297 = vmatprep.subr.bf16.mxu1 %v1374_v19 }
  0x2b   : > { %1318 = vmatpush3.bf16.msra.mxu0 %v1374_v19 }
  0x2c   : > { %1319 = vmatprep.subr.bf16.mxu0 %v1375_v20 }
  0x2d   : > { %1298 = vmatpush3.bf16.msra.mxu1 %v1374_v19 }
  0x2e   : > { %1299 = vmatprep.subr.bf16.mxu1 %v1375_v20 }
  0x2f   : > { %1320 = vmatpush3.bf16.msra.mxu0 %v1375_v20 }
  0x30   : > { %1321 = vmatprep.subr.bf16.mxu0 %v1376_v21 }
  0x31   : > { %1300 = vmatpush3.bf16.msra.mxu1 %v1375_v20 }
  0x32   : > { %1301 = vmatprep.subr.bf16.mxu1 %v1376_v21 }
  0x33   : > { %1322 = vmatpush3.bf16.msra.mxu0 %v1376_v21 }
  0x34   : > { %1323 = vmatprep.subr.bf16.mxu0 %v1377_v22 }
  0x35   : > { %1302 = vmatpush3.bf16.msra.mxu1 %v1376_v21 }
  0x36   : > { %1303 = vmatprep.subr.bf16.mxu1 %v1377_v22 }
  0x37   : > { %1324 = vmatpush3.bf16.msra.mxu0 %v1377_v22 }
  0x38   : > { %1325 = vmatprep.subr.bf16.mxu0 %v1378_v23 }
  0x39   : > { %1304 = vmatpush3.bf16.msra.mxu1 %v1377_v22 }
  0x3a   : > { %1305 = vmatprep.subr.bf16.mxu1 %v1378_v23 }
  0x3b   : > { %1326 = vmatpush3.bf16.msra.mxu0 %v1378_v23 }
  0x3d   : > { %1306 = vmatpush3.bf16.msra.mxu1 %v1378_v23  ;;  %v774_v23 = vld [vmem:[%s1683_s3 + $0x20] sm:$0xff] }
  0x99   : > { %v491_v24 = vpop.permute.xlu0 %490 }
  0x9a   : > { %v501_v33 = vpop.permute.xlu1 %500 }
  0x9d   : > { %v496_v28 = vpop.permute.xlu0 %495 }
  0x9e   : > { %v506_v44 = vpop.permute.xlu1 %505 }
  0xf3   : > { %v569_v25 = vpop.f32.mrb[0].mxu1 }
  0xf4   : > { %v570_v26 = vadd.f32 %v569_v25, %v491_v24  ;;  %v571_v27 = vpop.f32.mrb[1].mxu1  ;;  %v775_v25 = vld [vmem:[%s1683_s3 + $0x28] sm:$0xff] }
  0xf5   : > { %v572_v29 = vadd.f32 %v571_v27, %v491_v24  ;;  %v573_v30 = vpop.f32.mrb[2].mxu1 }
  0xf6   : > { %v574_v31 = vadd.f32 %v573_v30, %v496_v28  ;;  %v575_v32 = vpop.f32.mrb[3].mxu1  ;;  %v588_v35 = vmax.f32 %v570_v26, 0.0 }
  0xf7   : > { %v576_v34 = vadd.f32 %v575_v32, %v496_v28  ;;  %v589_v37 = vmax.f32 %v572_v29, 0.0  ;;  %v776_v28 = vld [vmem:[%s1683_s3 + $0x30] sm:$0xff] }
  0xf8   : > { %v590_v36 = vmax.f32 %v574_v31, 0.0  ;;  %v777_v31 = vld [vmem:[%s1683_s3 + $0x38] sm:$0xff] }
  0xf9   : > { %v591_v38 = vmax.f32 %v576_v34, 0.0 }
  0xfa   : > { %v1583_v39 = vpack.c.bf16 %v590_v36, %v588_v35 }
  0xfb   : > { %v579_v40 = vpop.f32.mrb[4].mxu1  ;;  %v1585_v41 = vpack.c.bf16 %v591_v38, %v589_v37 }
  0xfc   : > { %v580_v42 = vadd.f32 %v579_v40, %v501_v33  ;;  %v581_v43 = vpop.f32.mrb[5].mxu1  ;;  %1307 = vmatprep.mubr.bf16.mxu1 %v1583_v39 }
  0xfd   : > { %v582_v45 = vadd.f32 %v581_v43, %v501_v33  ;;  %v583_v46 = vpop.f32.mrb[6].mxu1  ;;  %1327 = vmatprep.mubr.bf16.mxu0 %v1585_v41 }
  0xfe   : > { %v584_v47 = vadd.f32 %v583_v46, %v506_v44  ;;  %v585_v48 = vpop.f32.mrb[7].mxu1  ;;  %v592_v50 = vmax.f32 %v580_v42, 0.0  ;;  %v1382_v46 = vld [vmem:[%s1688_s8 + $0x8] sm:$0xff]  }
  0xff   : > { %v586_v49 = vadd.f32 %v585_v48, %v506_v44  ;;  %v593_v52 = vmax.f32 %v582_v45, 0.0  ;;  %v1381_v45 = vld [vmem:[%s1688_s8] sm:$0xff]  }
 0x100   : > { %v594_v51 = vmax.f32 %v584_v47, 0.0  ;;  %v1013_v47 = vpop.permute.xlu0 %1012 }
 0x101   : > { %v595_v53 = vmax.f32 %v586_v49, 0.0 }
 0x102   : > { %v1589_v54 = vpack.c.bf16 %v594_v51, %v592_v50  ;;  %v1018_v51 = vpop.permute.xlu1 %1017 }
 0x103   : > { %v1591_v55 = vpack.c.bf16 %v595_v53, %v593_v52 }
 0x104   : > { %1308 = vmatmul.mubr.bf16.vlgmr.msra.gmra.mrb[8].mxu1 %v1589_v54 }
 0x105   : > { %1328 = vmatmul.mubr.bf16.vlgmr.msra.gmra.mrb[0].mxu0 %v1591_v55  ;;  %827 = vmatprep.mubr.bf16.mxu1 %v1417_v2 }
 0x106   : > { %916 = vmatprep.mubr.bf16.mxu0 %v1417_v2 }
 0x1d7   : > { %v1309_v56 = vpop.f32.mrb[8].mxu1 }
 0x1d8   : > { %v698_v57 = vpop.f32.mrb[9].mxu1  ;;  %v1329_v58 = vpop.f32.mrb[0].mxu0 }
 0x1d9   : > { %v1310_v59 = vpop.f32.mrb[10].mxu1  ;;  %v747_v60 = vpop.f32.mrb[1].mxu0 }
 0x1da   : > { %v768_v61 = vpack.c.bf16 %v1310_v59, %v1309_v56  ;;  %v701_v62 = vpop.f32.mrb[11].mxu1  ;;  %v1330_v63 = vpop.f32.mrb[2].mxu0 }
 0x1db   : > { %v766_v0 = vpack.c.bf16 %v701_v62, %v698_v57  ;;  %v769_v1 = vpack.c.bf16 %v1330_v63, %v1329_v58  ;;  %v750_v3 = vpop.f32.mrb[3].mxu0 }
 0x1dc   : > { %v767_v4 = vpack.c.bf16 %v750_v3, %v747_v60  ;;  %v1028_v3 = vpop.permute.xlu1 %1027 }
 0x1de   : > { %795 = vmatprep.subr.bf16.mxu1 %v767_v4 }
 0x1df   : > { %796 = vmatpush1.bf16.msra.mxu1 %v766_v0 }
 0x1e0   : > { %797 = vmatprep.subr.bf16.mxu1 %v769_v1 }
 0x1e3   : > { %798 = vmatpush1.bf16.msra.mxu1 %v768_v61  ;;  %v1023_v61 = vpop.permute.xlu0 %1022 }
 0x1e6   : > { %1255 = vmatmul.mubr.msk.bf16.vlgmr.msra.gmra.mrb[12].mxu1 %vm788_vm1, %v1379_v5 }
 0x1e7   : > { %837 = vmatprep.mubr.bf16.mxu1 %v1417_v2 }
 0x1ee   : > { %1256 = vmatmul.mubr.msk.bf16.gmra.mrb[16].mxu1 %vm788_vm1, %v1380_v6 }
 0x1ef   : > { %1092 = vmatprep.mubr.bf16.mxu1 %v1417_v2 }
 0x2b9   : > { %v829_v9 = vpop.f32.mrb[12].mxu1 }
 0x2ba   : > { %v830_v11 = vadd.f32 %v829_v9, %v770_v7  ;;  %v831_v12 = vpop.f32.mrb[13].mxu1 }
 0x2bb   : > { %v832_v14 = vadd.f32 %v831_v12, %v771_v8  ;;  %v833_v15 = vpop.f32.mrb[14].mxu1 }
 0x2bc   : > { %v834_v16 = vadd.f32 %v833_v15, %v772_v10  ;;  %v835_v17 = vpop.f32.mrb[15].mxu1  ;;  %v848_v19 = vmax.f32 %v830_v11, 0.0  ;;  %v1046_v15 = vld [vmem:[%s1690_s10] sm:$0xf] }
 0x2bd   : > { %v836_v18 = vadd.f32 %v835_v17, %v773_v13  ;;  %v849_v21 = vmax.f32 %v832_v14, 0.0  ;;  %v1055_v17 = vpop.permute.xlu0 %1054 }
 0x2be   : > { %v850_v20 = vmax.f32 %v834_v16, 0.0  ;;  %v1109_v16 = vld [vmem:[%s469_s15] sm:$0xff] }
 0x2bf   : > { %v851_v22 = vmax.f32 %v836_v18, 0.0 }
 0x2c0   : > { %v864_v24 = vpack.c.bf16 %v850_v20, %v848_v19  ;;  %v1110_v19 = vunpack.c.l.bf16 %v1109_v16 }
 0x2c1   : > { %v865_v26 = vpack.c.bf16 %v851_v22, %v849_v21  ;;  %v839_v27 = vpop.f32.mrb[16].mxu1  ;;  %v1111_v22 = vunpack.c.h.bf16 %v1109_v16 }
 0x2c2   : > { %v840_v29 = vadd.f32 %v839_v27, %v774_v23  ;;  %v841_v30 = vpop.f32.mrb[17].mxu1  ;;  %vm1112_vm3 = vcmp.eq.f32.partialorder %v1110_v19, 0.0 }
 0x2c3   : > { %v842_v32 = vadd.f32 %v841_v30, %v775_v25  ;;  %v843_v33 = vpop.f32.mrb[18].mxu1  ;;  %884 = vmatprep.subr.bf16.mxu0 %v865_v26  ;;  %vm1113_vm5 = vcmp.eq.f32.partialorder %v1111_v22, 0.0 }
 0x2c4   : > { %v844_v34 = vadd.f32 %v843_v33, %v776_v28  ;;  %v845_v35 = vpop.f32.mrb[19].mxu1  ;;  %885 = vmatpush1.bf16.msra.mxu0 %v864_v24  ;;  %v852_v37 = vmax.f32 %v840_v29, 0.0 }
 0x2c5   : > { %v846_v36 = vadd.f32 %v845_v35, %v777_v31  ;;  %v853_v40 = vmax.f32 %v842_v32, 0.0 }
 0x2c6   : > { %v854_v38 = vmax.f32 %v844_v34, 0.0 }
 0x2c7   : > { %v855_v42 = vmax.f32 %v846_v36, 0.0 }
 0x2c8   : > { %v866_v43 = vpack.c.bf16 %v854_v38, %v852_v37 }
 0x2c9   : > { %v867_v44 = vpack.c.bf16 %v855_v42, %v853_v40 }
 0x2cb   : > { %886 = vmatprep.subr.bf16.mxu0 %v867_v44 }
 0x2cc   : > { %887 = vmatpush1.bf16.msra.mxu0 %v866_v43 }
 0x2cd   : > { %953 = vmatprep.subr.bf16.mxu0 %v1585_v41  ;;  %v1383_v41 = vld [vmem:[%s1687_s7] sm:$0xff]  }
 0x2cf   : > { %1259 = vmatmul.mubr.msk.bf16.vlgmr.msra.gmra.mrb[4].mxu0 %vm788_vm1, %v1381_v45 }
 0x2d0   : > { %954 = vmatpush1.bf16.msra.mxu0 %v1583_v39  ;;  %926 = vmatprep.mubr.bf16.mxu0 %v1417_v2  ;;  %v1384_v39 = vld [vmem:[%s1687_s7 + $0x8] sm:$0xff]  }
 0x2d1   : > { %955 = vmatprep.subr.bf16.mxu0 %v1591_v55 }
 0x2d4   : > { %956 = vmatpush1.bf16.msra.mxu0 %v1589_v54 }
 0x2d7   : > { %1260 = vmatmul.mubr.msk.bf16.gmra.mrb[8].mxu0 %vm788_vm1, %v1382_v46 }
 0x2d8   : > { %985 = vmatprep.mubr.bf16.mxu0 %v1417_v2 }
 0x2df   : > { %1263 = vmatmul.mubr.msk.bf16.vlgmr.msra.gmra.mrb[4].mxu0 %vm788_vm1, %v1383_v41 }
 0x2e0   : > { %995 = vmatprep.mubr.bf16.mxu0 %v1417_v2 }
 0x2e7   : > { %1264 = vmatmul.mubr.msk.bf16.gmra.mrb[8].mxu0 %vm788_vm1, %v1384_v39 }
 0x3b2   : > { %v987_v48 = vpop.f32.mrb[4].mxu0 }
 0x3b3   : > { %v1030_v49 = vadd.f32 %v1013_v47, %v987_v48  ;;  %v989_v50 = vpop.f32.mrb[5].mxu0 }
 0x3b4   : > { %v1031_v52 = vadd.f32 %v1013_v47, %v989_v50  ;;  %v991_v53 = vpop.f32.mrb[6].mxu0 }
 0x3b5   : > { %v1032_v54 = vadd.f32 %v1018_v51, %v991_v53  ;;  %v993_v55 = vpop.f32.mrb[7].mxu0  ;;  %v1038_v57 = vmax.f32 %v1030_v49, 0.0 }
 0x3b6   : > { %v1033_v56 = vadd.f32 %v1018_v51, %v993_v55  ;;  %v1039_v59 = vmax.f32 %v1031_v52, 0.0 }
 0x3b7   : > { %v1040_v58 = vmax.f32 %v1032_v54, 0.0 }
 0x3b8   : > { %v1041_v2 = vmax.f32 %v1033_v56, 0.0 }
 0x3b9   : > { %v1047_v60 = vpack.c.bf16 %v1040_v58, %v1038_v57 }
 0x3ba   : > { %v1048_v62 = vpack.c.bf16 %v1041_v2, %v1039_v59  ;;  %v997_v63 = vpop.f32.mrb[8].mxu0 }
 0x3bb   : > { %v1034_v0 = vadd.f32 %v1023_v61, %v997_v63  ;;  %v999_v1 = vpop.f32.mrb[9].mxu0 }
 0x3bc   : > { %v1035_v4 = vadd.f32 %v1023_v61, %v999_v1  ;;  %v1001_v5 = vpop.f32.mrb[10].mxu0  ;;  %1060 = vmatprep.subr.bf16.mxu1 %v1048_v62 }
 0x3bd   : > { %v1036_v6 = vadd.f32 %v1028_v3, %v1001_v5  ;;  %v1003_v7 = vpop.f32.mrb[11].mxu0  ;;  %1061 = vmatpush1.bf16.msra.mxu1 %v1047_v60  ;;  %v1042_v9 = vmax.f32 %v1034_v0, 0.0 }
 0x3be   : > { %v1037_v8 = vadd.f32 %v1028_v3, %v1003_v7  ;;  %v1043_v11 = vmax.f32 %v1035_v4, 0.0 }
 0x3bf   : > { %v1044_v10 = vmax.f32 %v1036_v6, 0.0 }
 0x3c0   : > { %v1045_v12 = vmax.f32 %v1037_v8, 0.0 }
 0x3c1   : > { %v1049_v13 = vpack.c.bf16 %v1044_v10, %v1042_v9 }
 0x3c2   : > { %v1050_v14 = vpack.c.bf16 %v1045_v12, %v1043_v11 }
 0x3c4   : > { %1062 = vmatprep.subr.bf16.mxu1 %v1050_v14 }
 0x3c5   : > { %1063 = vmatpush1.bf16.msra.mxu1 %v1049_v13 }
 0x3c8   : > { %1265 = vmatmul.mubr.msk.bf16.vlgmr.msra.gmra.mrb[20].mxu1 %vm788_vm1, %v1046_v15 }
 0x49b   : > { %v1094_v18 = vpop.f32.mrb[20].mxu1 }
 0x49c   : > { %v1095_v20 = vadd.f32 %v1094_v18, %v1055_v17  ;;  %v1096_v21 = vpop.f32.mrb[21].mxu1 }
 0x49d   : > { %v1097_v23 = vadd.f32 %v1096_v21, %v1055_v17  ;;  %v1098_v24 = vpop.f32.mrb[22].mxu1 }
 0x49e   : > { %vm1101_vm2 = vcmp.ne.f32.partialorder %v1095_v20, %v1095_v20  ;;  %v1099_v25 = vpop.f32.mrb[23].mxu1 }
 0x49f   : > { %v1103_v26 = vsel %vm1101_vm2, 0.0, %v1095_v20  ;;  %vm1102_vm4 = vcmp.ne.f32.partialorder %v1097_v23, %v1097_v23 }
 0x4a0   : > { %v1266_v27 = vclamps-f32 %v1103_v26, 1000000.0  ;;  %v1104_v28 = vsel %vm1102_vm4, 0.0, %v1097_v23 }
 0x4a1   : > { %v1267_v29 = vclamps-f32 %v1104_v28, 1000000.0 }
 0x4a2   : > { %v1114_v30 = vsel %vm1112_vm3, -1e+10, %v1266_v27 }
 0x4a3   : > { %v1116_v31 = vrot.slane %v1114_v30, 4  ;;  %v1115_v32 = vsel %vm1113_vm5, -1e+10, %v1267_v29 }
 0x4a4   : > { %v1122_v33 = vrot.slane %v1115_v32, 4 }
 0x4a5   : > { %v1117_v34 = vmax.f32 %v1114_v30, %v1116_v31 }
 0x4a6   : > { %v1123_v35 = vmax.f32 %v1115_v32, %v1122_v33 }
 0x4a7   : > { %v1118_v36 = vrot.slane %v1117_v34, 2 }
 0x4a8   : > { %v1124_v37 = vrot.slane %v1123_v35, 2 }
 0x4a9   : > { %v1119_v38 = vmax.f32 %v1117_v34, %v1118_v36 }
 0x4aa   : > { %v1125_v40 = vmax.f32 %v1123_v35, %v1124_v37 }
 0x4ab   : > { %v1120_v42 = vrot.slane %v1119_v38, 1 }
 0x4ac   : > { %v1126_v43 = vrot.slane %v1125_v40, 1 }
 0x4ad   : > { %v1121_v44 = vmax.f32 %v1119_v38, %v1120_v42 }
 0x4ae   : > { %v1127_v45 = vmax.f32 %v1125_v40, %v1126_v43 }
 0x4af   : > { %v1128_v46 = vsub.f32 %v1114_v30, %v1121_v44 }
 0x4b0   : > { %v1129_v41 = vsub.f32 %v1115_v32, %v1127_v45 }
 0x4b1   : > { %v1130_v39 = vmul.f32 1.442695, %v1128_v46 }
 0x4b2   : > { %v1132_v47 = vmul.f32 1.442695, %v1129_v41 }
 0x4b3   : > { %1385 = vpow2.f32 %v1130_v39 }
 0x4b4   : > { %1387 = vpow2.f32 %v1132_v47 }
 0x4bd   : > { %v1386_v48 = vpop.eup %1385 }
 0x4be   : > { %v1388_v49 = vpop.eup %1387  ;;  %v1134_v50 = vrot.slane %v1386_v48, 4 }
 0x4bf   : > { %v1140_v51 = vrot.slane %v1388_v49, 4 }
 0x4c0   : > { %v1135_v52 = vadd.f32 %v1386_v48, %v1134_v50 }
 0x4c1   : > { %v1141_v53 = vadd.f32 %v1388_v49, %v1140_v51 }
 0x4c2   : > { %v1136_v54 = vrot.slane %v1135_v52, 2 }
 0x4c3   : > { %v1142_v55 = vrot.slane %v1141_v53, 2 }
 0x4c4   : > { %v1137_v56 = vadd.f32 %v1136_v54, %v1135_v52 }
 0x4c5   : > { %v1143_v57 = vadd.f32 %v1142_v55, %v1141_v53 }
 0x4c6   : > { %v1138_v58 = vrot.slane %v1137_v56, 1 }
 0x4c7   : > { %v1144_v59 = vrot.slane %v1143_v57, 1 }
 0x4c8   : > { %v1139_v2 = vadd.f32 %v1138_v58, %v1137_v56 }
 0x4c9   : > { %v1145_v60 = vadd.f32 %v1144_v59, %v1143_v57 }
 0x4ca   : > { %1389 = vrcp.f32 %v1139_v2 }
 0x4cb   : > { %1391 = vrcp.f32 %v1145_v60 }
 0x4d4   : > { %v1390_v61 = vpop.eup %1389 }
 0x4d5   : > { %v1392_v62 = vpop.eup %1391  ;;  %v1148_v63 = vmul.f32 %v1390_v61, %v1386_v48 }
 0x4d6   : > { %v1149_v0 = vmul.f32 %v1392_v62, %v1388_v49 }
 0x4d7   : > { %1150 = vst [vmem:[%s475_s17] sm:$0xff] %v1148_v63 }
 0x4d8   : > { %1151 = vst [vmem:[%s475_s17 + $0x8] sm:$0xff] %v1149_v0 }
 0x4d9 PF: > { %p19_p9 = scmp.ge.s32.totalorder %s1500_s25, 4   ;;  %s1693_s21 = smov %s1411_s22 }
 0x4da   : > { %s1694_s22 = smov %s1509_s28  ;;  %s1695_s23 = smov %s1500_s25 }
 0x4db   :  { %21 = sbr.rel (!%p19_p9) target bundleno = 2 (0x2), region = 144 }

</bundles_post_ra>
